<compile_context>
chip_gen: v6e
topology: v6e:2x2x1
jax: 0.10.0
libtpu: 0.0.40
codegen_flags: <defaults>
</compile_context>

<pallas_src>
import numpy as np

import jax
import jax.numpy as jnp
from jax.experimental import pallas as pl
from jax.experimental.pallas import tpu as pltpu


# Conv stack from the PyTorch module: Conv2dModel(in=1, channels=[8,20],
# kernel_sizes=[5,4], strides=[3,3], paddings=[1,1]), each followed by ReLU.
_CONV_CFG = ((8, 5, 3, 1), (20, 4, 3, 1))   # (out_channels, kernel, stride, pad)
_RS_OUT = 256                               # robot_state_mlp output width
_HEAD_HIDDEN = 256                          # q_head hidden width
_Q_LANES = 128                              # lane-dense q output width
_LANES = 128


def _conv_out(size, k, s, p):
    return (size + 2 * p - k) // s + 1


def _round_up(x, m):
    return -(-x // m) * m


# ------------------------------ Pallas kernel -------------------------------

def _fused_forward_kernel(cam_ref, sa_ref,
                          w1_ref, b1_ref, w2_ref, b2_ref,
                          wh1_ref, bq1_ref, wq2_ref, bq2_ref,
                          out_ref):
    """Whole QofMuVisionModel forward for one batch tile, fully VMEM resident.

    All matmul operands are bf16 (MXU-native on all gens); accumulation,
    biases and ReLU are f32.
    """
    f32, bf16 = jnp.float32, jnp.bfloat16

    # conv1: im2col + zero padding folded into w1 -> one dot on the flat camera.
    h1 = jnp.dot(cam_ref[...].astype(bf16), w1_ref[...],
                 preferred_element_type=f32)
    h1 = jnp.maximum(h1 + b1_ref[...], 0.0)               # [tb, 256]

    # conv2: its im2col gather + torch NCHW flatten folded into w2.
    h2 = jnp.dot(h1.astype(bf16), w2_ref[...], preferred_element_type=f32)
    h2 = jnp.maximum(h2 + b2_ref[...], 0.0)               # [tb, 128] (lanes >=80 are 0)

    # q-head layer 1: state+action live in the zero tail lanes of h2 (written
    # by the wrapper), so cnn + folded robot-state + action is a single dot.
    hin = (h2 + sa_ref[...]).astype(bf16)
    h = jnp.dot(hin, wh1_ref[...], preferred_element_type=f32)
    h = jnp.maximum(h + bq1_ref[...], 0.0)                 # [tb, 256]

    # q-head layer 2: lane-dense [256, 128] weight, real q in lane 0.
    q = jnp.dot(h.astype(bf16), wq2_ref[...], preferred_element_type=f32)
    out_ref[...] = q + bq2_ref[...]                        # [tb, 128]


# -------------------------- One-time weight folding ---------------------------

def prepare_fused_params(params, height, width):
    """Fold im2col / permutations / robot-state Linear into MXU-ready weights.

    Done on host with numpy (outside the hot path); matmul weights stored bf16.
    """
    (c1, k1, s1, pd1), (c2, k2, s2, pd2) = _CONV_CFG
    oh1, ow1 = _conv_out(height, k1, s1, pd1), _conv_out(width, k1, s1, pd1)
    oh2, ow2 = _conv_out(oh1, k2, s2, pd2), _conv_out(ow1, k2, s2, pd2)
    n1, n2 = oh1 * ow1, oh2 * ow2
    hw_pad = _round_up(height * width, _LANES)
    n1c1_pad = _round_up(n1 * c1, _LANES)
    n2c2_pad = _round_up(n2 * c2, _LANES)

    p = {k: np.asarray(v, np.float32) for k, v in params.items()}

    # conv1: fold im2col of the flattened camera (zero padding = omitted rows).
    w_c1 = p["w_c1"]                                       # [k1*k1, c1]
    w1 = np.zeros((hw_pad, n1c1_pad), np.float32)
    for pos1 in range(n1):
        oh, ow = divmod(pos1, ow1)
        for ki in range(k1):
            r = oh * s1 + ki - pd1
            if not 0 <= r < height:
                continue
            for kj in range(k1):
                c = ow * s1 + kj - pd1
                if not 0 <= c < width:
                    continue
                w1[r * width + c, pos1 * c1:(pos1 + 1) * c1] += w_c1[ki * k1 + kj]
    b1 = np.zeros((1, n1c1_pad), np.float32)
    b1[0, :n1 * c1] = np.tile(p["b_c1"], n1)

    # conv2: fold its im2col gather of h1 (feature order pos1*c1 + ci) into a
    # sparse [n1c1_pad, n2c2_pad] weight -> no data movement between convs.
    w_c2 = p["w_c2"].reshape(c1, k2, k2, c2)               # rows were (ci, ki, kj)
    w2 = np.zeros((n1c1_pad, n2c2_pad), np.float32)
    for pos2 in range(n2):
        o2h, o2w = divmod(pos2, ow2)
        for ki in range(k2):
            r = o2h * s2 + ki - pd2
            if not 0 <= r < oh1:
                continue
            for kj in range(k2):
                c = o2w * s2 + kj - pd2
                if not 0 <= c < ow1:
                    continue
                pos1 = r * ow1 + c
                w2[pos1 * c1:(pos1 + 1) * c1,
                   pos2 * c2:(pos2 + 1) * c2] += w_c2[:, ki, kj, :]
    b2 = np.zeros((1, n2c2_pad), np.float32)
    b2[0, :n2 * c2] = np.tile(p["b_c2"], n2)

    # q head layer 1: one merged [n2c2_pad, 256] weight:
    #   rows [0, conv_out)          : cnn weight, permuted from torch's NCHW
    #                                 flatten order (co*n2+pos2) to (pos2*c2+co)
    #   rows [conv_out, +state_dim) : robot_state_mlp folded in (w_rs @ w1s)
    #   rows [.., +action_size)     : action weight
    conv_out = n2 * c2
    state_dim = p["w_rs"].shape[0]
    w_q1 = p["w_q1"]
    w1s = w_q1[:_RS_OUT]
    w1c = w_q1[_RS_OUT:_RS_OUT + conv_out]
    w1a = w_q1[_RS_OUT + conv_out:]
    a_dim = w1a.shape[0]
    assert conv_out + state_dim + a_dim <= n2c2_pad, "state+action overflow pad lanes"
    perm = np.asarray([co * n2 + pos2 for pos2 in range(n2) for co in range(c2)])
    wh1 = np.zeros((n2c2_pad, _HEAD_HIDDEN), np.float32)
    wh1[:conv_out] = w1c[perm]
    wh1[conv_out:conv_out + state_dim] = p["w_rs"] @ w1s
    wh1[conv_out + state_dim:conv_out + state_dim + a_dim] = w1a
    bq1 = (p["b_rs"] @ w1s + p["b_q1"]).reshape(1, -1)

    # Final layer widened to lane-dense [256, 128]; lane 0 is the real q.
    wq2 = np.zeros((_HEAD_HIDDEN, _Q_LANES), np.float32)
    wq2[:, 0] = p["w_q2"][:, 0]
    bq2 = np.zeros((1, _Q_LANES), np.float32)
    bq2[0, 0] = p["b_q2"][0]

    bf = jnp.bfloat16
    return dict(w1=jnp.asarray(w1, bf), b1=jnp.asarray(b1),
                w2=jnp.asarray(w2, bf), b2=jnp.asarray(b2),
                wh1=jnp.asarray(wh1, bf), bq1=jnp.asarray(bq1),
                wq2=jnp.asarray(wq2, bf), bq2=jnp.asarray(bq2))


# ------------------------------- Forward wrapper -----------------------------

def _batch_tiling(b):
    """(padded_batch, tile) — single step for tiny b, 2 steps for medium b
    (keeps both v7x TensorCores busy), tb=128 for large b."""
    bp = _round_up(max(b, 1), 8)
    if bp <= 16:
        return bp, bp
    if bp <= 256:
        tb = _round_up((bp + 1) // 2, 8)
        return 2 * tb, tb
    tb = 128
    return _round_up(bp, tb), tb


@jax.jit
def qof_mu_vision_forward(fused, state, camera, action):
    """state [B, Ds], camera [B, H, W], action [B, A] -> q [B]."""
    b, ds = state.shape
    _, height, width = camera.shape
    (c1, k1, s1, pd1), (c2, k2, s2, pd2) = _CONV_CFG
    oh1, ow1 = _conv_out(height, k1, s1, pd1), _conv_out(width, k1, s1, pd1)
    oh2, ow2 = _conv_out(oh1, k2, s2, pd2), _conv_out(ow1, k2, s2, pd2)
    conv_out = oh2 * ow2 * c2
    hw = height * width
    hw_pad = _round_up(hw, _LANES)
    n2c2_pad = _round_up(conv_out, _LANES)

    bp, tb = _batch_tiling(b)
    n_steps = bp // tb

    # Camera flattened + lane-padded: one contiguous, lane-aligned DMA per tile.
    cam = camera.reshape(b, hw).astype(jnp.float32)
    cam = jnp.pad(cam, ((0, bp - b), (0, hw_pad - hw)))

    # State+action packed into the zero tail lanes of conv2's padded output so
    # q-head layer 1 is a single dot inside the kernel.
    sa = jnp.zeros((bp, n2c2_pad), jnp.float32)
    sa = jax.lax.dynamic_update_slice(sa, state.astype(jnp.float32), (0, conv_out))
    sa = jax.lax.dynamic_update_slice(sa, action.astype(jnp.float32),
                                      (0, conv_out + ds))

    weights = (fused["w1"], fused["b1"], fused["w2"], fused["b2"],
               fused["wh1"], fused["bq1"], fused["wq2"], fused["bq2"])

    def w_spec(x):
        # Constant index map across the grid; once there is >1 step, single-
        # buffer these resident weights (double-buffering buys nothing).
        if n_steps > 1:
            return pl.BlockSpec(x.shape, lambda i: (0,) * x.ndim,
                                pipeline_mode=pl.Buffered(1))
        return pl.BlockSpec(x.shape, lambda i: (0,) * x.ndim)

    out = pl.pallas_call(
        _fused_forward_kernel,
        out_shape=jax.ShapeDtypeStruct((bp, _Q_LANES), jnp.float32),
        grid=(n_steps,),
        in_specs=[pl.BlockSpec((tb, hw_pad), lambda i: (i, 0)),
                  pl.BlockSpec((tb, n2c2_pad), lambda i: (i, 0))]
                 + [w_spec(w) for w in weights],
        out_specs=pl.BlockSpec((tb, _Q_LANES), lambda i: (i, 0)),
        compiler_params=pltpu.CompilerParams(
            dimension_semantics=("parallel",)),
    )(cam, sa, *weights)
    return out[:b, 0]   # squeeze(-1), drop batch padding


# ------------------------- Pure-JAX reference (check) ------------------------

def _im2col_nchw(x, kh, kw, stride, pad):
    n, c, h, w = x.shape
    xp = jnp.pad(x, ((0, 0), (0, 0), (pad, pad), (pad, pad)))
    oh = (h + 2 * pad - kh) // stride + 1
    ow = (w + 2 * pad - kw) // stride + 1
    cols = []
    for i in range(kh):
        for j in range(kw):
            cols.append(xp[:, :, i:i + stride * (oh - 1) + 1:stride,
                               j:j + stride * (ow - 1) + 1:stride])
    patches = jnp.stack(cols, axis=2)                       # [N, C, KH*KW, OH, OW]
    patches = patches.reshape(n, c * kh * kw, oh * ow)
    patches = patches.transpose(0, 2, 1).reshape(n * oh * ow, c * kh * kw)
    return patches, oh, ow


def ref_forward(params, state, camera, action, height, width):
    """Direct (unfused, f32) implementation of the PyTorch module semantics."""
    b = state.shape[0]
    x = camera.reshape(b, 1, height, width)
    p1, oh1, ow1 = _im2col_nchw(x, 5, 5, 3, 1)
    h1 = jnp.maximum(p1 @ params["w_c1"] + params["b_c1"], 0.0)
    h1 = h1.reshape(b, oh1, ow1, 8).transpose(0, 3, 1, 2)
    p2, oh2, ow2 = _im2col_nchw(h1, 4, 4, 3, 1)
    h2 = jnp.maximum(p2 @ params["w_c2"] + params["b_c2"], 0.0)
    h2 = h2.reshape(b, oh2, ow2, 20).transpose(0, 3, 1, 2)
    cnn_out = h2.reshape(b, -1)                              # torch .view order
    rs = state @ params["w_rs"] + params["b_rs"]
    head_in = jnp.concatenate([rs, cnn_out, action], axis=-1)
    h = jnp.maximum(head_in @ params["w_q1"] + params["b_q1"], 0.0)
    return (h @ params["w_q2"] + params["b_q2"])[:, 0]


# ------------------------------- Params / main --------------------------------

def init_params(key, robot_state_dim, action_size, height, width):
    (c1, k1, s1, pd1), (c2, k2, s2, pd2) = _CONV_CFG
    oh1, ow1 = _conv_out(height, k1, s1, pd1), _conv_out(width, k1, s1, pd1)
    oh2, ow2 = _conv_out(oh1, k2, s2, pd2), _conv_out(ow1, k2, s2, pd2)
    conv_out_size = c2 * oh2 * ow2
    keys = jax.random.split(key, 10)
    s = 0.1
    return {
        "w_c1": s * jax.random.normal(keys[0], (1 * k1 * k1, c1), jnp.float32),
        "b_c1": s * jax.random.normal(keys[1], (c1,), jnp.float32),
        "w_c2": s * jax.random.normal(keys[2], (c1 * k2 * k2, c2), jnp.float32),
        "b_c2": s * jax.random.normal(keys[3], (c2,), jnp.float32),
        "w_rs": s * jax.random.normal(keys[4], (robot_state_dim, _RS_OUT), jnp.float32),
        "b_rs": s * jax.random.normal(keys[5], (_RS_OUT,), jnp.float32),
        "w_q1": s * jax.random.normal(
            keys[6], (_RS_OUT + conv_out_size + action_size, _HEAD_HIDDEN), jnp.float32),
        "b_q1": s * jax.random.normal(keys[7], (_HEAD_HIDDEN,), jnp.float32),
        "w_q2": s * jax.random.normal(keys[8], (_HEAD_HIDDEN, 1), jnp.float32),
        "b_q2": s * jax.random.normal(keys[9], (1,), jnp.float32),
        # log_std parameter exists in the module but is unused in forward().
        "log_std": jnp.zeros((action_size,), jnp.float32),
    }


if __name__ == "__main__":
    HEIGHT, WIDTH = 16, 16
    BATCH = 2
    ROBOT_STATE_DIM = 4
    ACTION_SIZE = 3

    key = jax.random.PRNGKey(0)
    kp, ks, kc, ka = jax.random.split(key, 4)
    params = init_params(kp, ROBOT_STATE_DIM, ACTION_SIZE, HEIGHT, WIDTH)

    state = jax.random.normal(ks, (BATCH, ROBOT_STATE_DIM), jnp.float32)
    camera = jax.random.normal(kc, (BATCH, HEIGHT, WIDTH), jnp.float32)
    action = jax.random.normal(ka, (BATCH, ACTION_SIZE), jnp.float32)

    # One-time weight folding / permutation (kept out of the hot path).
    fused = prepare_fused_params(params, HEIGHT, WIDTH)

    q = qof_mu_vision_forward(fused, state, camera, action)
    q = jax.block_until_ready(q)

    with jax.default_matmul_precision("highest"):
        q_ref = ref_forward(params, state, camera, action, HEIGHT, WIDTH)

    assert q.shape == (BATCH,), q.shape
    # Kernel uses bf16 MXU operands with f32 accumulation (reference is pure
    # f32), so the tolerance covers bf16 operand quantization across the four
    # chained matmuls plus the (exact-in-real-arithmetic) weight folds.
    assert jnp.allclose(q, q_ref, atol=5e-2, rtol=5e-2), (q, q_ref)

    print("KERNEL_OK")
</pallas_src>

<mosaic_0001>
module attributes {stable_mosaic.version = 11 : i64} {
  func.func @_fused_forward_kernel(%arg0: i32, %arg1: memref<8x256xf32, #tpu.memory_space<vmem>>, %arg2: memref<8x128xf32, #tpu.memory_space<vmem>>, %arg3: memref<256x256xbf16, #tpu.memory_space<vmem>>, %arg4: memref<1x256xf32, #tpu.memory_space<vmem>>, %arg5: memref<256x128xbf16, #tpu.memory_space<vmem>>, %arg6: memref<1x128xf32, #tpu.memory_space<vmem>>, %arg7: memref<128x256xbf16, #tpu.memory_space<vmem>>, %arg8: memref<1x256xf32, #tpu.memory_space<vmem>>, %arg9: memref<256x128xbf16, #tpu.memory_space<vmem>>, %arg10: memref<1x128xf32, #tpu.memory_space<vmem>>, %arg11: memref<8x128xf32, #tpu.memory_space<vmem>>) attributes {dimension_semantics = [#tpu.dimension_semantics<parallel>], iteration_bounds = array<i64: 1>, scalar_prefetch = 0 : i64, scratch_operands = 0 : i64, tpu.core_type = #tpu.core_type<tc>, window_params = [{transform_indices = @transform_0, window_bounds = array<i64: 8, 256>}, {transform_indices = @transform_1, window_bounds = array<i64: 8, 128>}, {pipeline_mode = #tpu.pipeline_mode<synchronous>, transform_indices = @transform_2, window_bounds = array<i64: 256, 256>}, {pipeline_mode = #tpu.pipeline_mode<synchronous>, transform_indices = @transform_3, window_bounds = array<i64: 1, 256>}, {pipeline_mode = #tpu.pipeline_mode<synchronous>, transform_indices = @transform_4, window_bounds = array<i64: 256, 128>}, {pipeline_mode = #tpu.pipeline_mode<synchronous>, transform_indices = @transform_5, window_bounds = array<i64: 1, 128>}, {pipeline_mode = #tpu.pipeline_mode<synchronous>, transform_indices = @transform_6, window_bounds = array<i64: 128, 256>}, {pipeline_mode = #tpu.pipeline_mode<synchronous>, transform_indices = @transform_7, window_bounds = array<i64: 1, 256>}, {pipeline_mode = #tpu.pipeline_mode<synchronous>, transform_indices = @transform_8, window_bounds = array<i64: 256, 128>}, {pipeline_mode = #tpu.pipeline_mode<synchronous>, transform_indices = @transform_9, window_bounds = array<i64: 1, 128>}, {transform_indices = @transform_10, window_bounds = array<i64: 8, 128>}]} {
    %c0 = arith.constant 0 : index
    %c0_0 = arith.constant 0 : index
    %0 = vector.load %arg1[%c0, %c0_0] : memref<8x256xf32, #tpu.memory_space<vmem>>, vector<8x256xf32>
    %1 = arith.truncf %0 : vector<8x256xf32> to vector<8x256xbf16>
    %c0_1 = arith.constant 0 : index
    %c0_2 = arith.constant 0 : index
    %2 = vector.load %arg3[%c0_1, %c0_2] : memref<256x256xbf16, #tpu.memory_space<vmem>>, vector<256x256xbf16>
    %cst = arith.constant dense<0.000000e+00> : vector<8x256xf32>
    %3 = tpu.matmul %1, %2, %cst {dimension_numbers = #tpu.dot_dimension_numbers<[1], [0], [0], [1], [0, 0, 1, 1], [], []>} : vector<8x256xbf16>, vector<256x256xbf16>, vector<8x256xf32> -> vector<8x256xf32>
    %c0_3 = arith.constant 0 : index
    %c0_4 = arith.constant 0 : index
    %4 = vector.load %arg4[%c0_3, %c0_4] : memref<1x256xf32, #tpu.memory_space<vmem>>, vector<1x256xf32>
    %5 = vector.broadcast %4 : vector<1x256xf32> to vector<8x256xf32>
    %6 = arith.addf %3, %5 : vector<8x256xf32>
    %cst_5 = arith.constant 0.000000e+00 : f32
    %7 = vector.broadcast %cst_5 : f32 to vector<8x256xf32>
    %8 = arith.maximumf %6, %7 : vector<8x256xf32>
    %9 = arith.truncf %8 : vector<8x256xf32> to vector<8x256xbf16>
    %c0_6 = arith.constant 0 : index
    %c0_7 = arith.constant 0 : index
    %10 = vector.load %arg5[%c0_6, %c0_7] : memref<256x128xbf16, #tpu.memory_space<vmem>>, vector<256x128xbf16>
    %cst_8 = arith.constant dense<0.000000e+00> : vector<8x128xf32>
    %11 = tpu.matmul %9, %10, %cst_8 {dimension_numbers = #tpu.dot_dimension_numbers<[1], [0], [0], [1], [0, 0, 1, 1], [], []>} : vector<8x256xbf16>, vector<256x128xbf16>, vector<8x128xf32> -> vector<8x128xf32>
    %c0_9 = arith.constant 0 : index
    %c0_10 = arith.constant 0 : index
    %12 = vector.load %arg6[%c0_9, %c0_10] : memref<1x128xf32, #tpu.memory_space<vmem>>, vector<1x128xf32>
    %13 = vector.broadcast %12 : vector<1x128xf32> to vector<8x128xf32>
    %14 = arith.addf %11, %13 : vector<8x128xf32>
    %cst_11 = arith.constant 0.000000e+00 : f32
    %15 = vector.broadcast %cst_11 : f32 to vector<8x128xf32>
    %16 = arith.maximumf %14, %15 : vector<8x128xf32>
    %c0_12 = arith.constant 0 : index
    %c0_13 = arith.constant 0 : index
    %17 = vector.load %arg2[%c0_12, %c0_13] : memref<8x128xf32, #tpu.memory_space<vmem>>, vector<8x128xf32>
    %18 = arith.addf %16, %17 : vector<8x128xf32>
    %19 = arith.truncf %18 : vector<8x128xf32> to vector<8x128xbf16>
    %c0_14 = arith.constant 0 : index
    %c0_15 = arith.constant 0 : index
    %20 = vector.load %arg7[%c0_14, %c0_15] : memref<128x256xbf16, #tpu.memory_space<vmem>>, vector<128x256xbf16>
    %cst_16 = arith.constant dense<0.000000e+00> : vector<8x256xf32>
    %21 = tpu.matmul %19, %20, %cst_16 {dimension_numbers = #tpu.dot_dimension_numbers<[1], [0], [0], [1], [0, 0, 1, 1], [], []>} : vector<8x128xbf16>, vector<128x256xbf16>, vector<8x256xf32> -> vector<8x256xf32>
    %c0_17 = arith.constant 0 : index
    %c0_18 = arith.constant 0 : index
    %22 = vector.load %arg8[%c0_17, %c0_18] : memref<1x256xf32, #tpu.memory_space<vmem>>, vector<1x256xf32>
    %23 = vector.broadcast %22 : vector<1x256xf32> to vector<8x256xf32>
    %24 = arith.addf %21, %23 : vector<8x256xf32>
    %cst_19 = arith.constant 0.000000e+00 : f32
    %25 = vector.broadcast %cst_19 : f32 to vector<8x256xf32>
    %26 = arith.maximumf %24, %25 : vector<8x256xf32>
    %27 = arith.truncf %26 : vector<8x256xf32> to vector<8x256xbf16>
    %c0_20 = arith.constant 0 : index
    %c0_21 = arith.constant 0 : index
    %28 = vector.load %arg9[%c0_20, %c0_21] : memref<256x128xbf16, #tpu.memory_space<vmem>>, vector<256x128xbf16>
    %cst_22 = arith.constant dense<0.000000e+00> : vector<8x128xf32>
    %29 = tpu.matmul %27, %28, %cst_22 {dimension_numbers = #tpu.dot_dimension_numbers<[1], [0], [0], [1], [0, 0, 1, 1], [], []>} : vector<8x256xbf16>, vector<256x128xbf16>, vector<8x128xf32> -> vector<8x128xf32>
    %c0_23 = arith.constant 0 : index
    %c0_24 = arith.constant 0 : index
    %30 = vector.load %arg10[%c0_23, %c0_24] : memref<1x128xf32, #tpu.memory_space<vmem>>, vector<1x128xf32>
    %31 = vector.broadcast %30 : vector<1x128xf32> to vector<8x128xf32>
    %32 = arith.addf %29, %31 : vector<8x128xf32>
    %c0_25 = arith.constant 0 : index
    %c0_26 = arith.constant 0 : index
    %33 = vector.load %arg11[%c0_25, %c0_26] : memref<8x128xf32, #tpu.memory_space<vmem>>, vector<8x128xf32>
    tpu.vector_store %arg11[%c0_25, %c0_26], %32 {strides = array<i32>} : memref<8x128xf32, #tpu.memory_space<vmem>>, vector<8x128xf32>,
    return
  }
  func.func @transform_0(%arg0: i32) -> (i32, i32) {
    %c0_i32 = arith.constant 0 : i32
    %c0_i32_0 = arith.constant 0 : i32
    return %arg0, %c0_i32 : i32, i32
  }
  func.func @transform_1(%arg0: i32) -> (i32, i32) {
    %c0_i32 = arith.constant 0 : i32
    %c0_i32_0 = arith.constant 0 : i32
    return %arg0, %c0_i32 : i32, i32
  }
  func.func @transform_2(%arg0: i32) -> (i32, i32) {
    %c0_i32 = arith.constant 0 : i32
    %c0_i32_0 = arith.constant 0 : i32
    %c0_i32_1 = arith.constant 0 : i32
    return %c0_i32, %c0_i32_0 : i32, i32
  }
  func.func @transform_3(%arg0: i32) -> (i32, i32) {
    %c0_i32 = arith.constant 0 : i32
    %c0_i32_0 = arith.constant 0 : i32
    %c0_i32_1 = arith.constant 0 : i32
    return %c0_i32, %c0_i32_0 : i32, i32
  }
  func.func @transform_4(%arg0: i32) -> (i32, i32) {
    %c0_i32 = arith.constant 0 : i32
    %c0_i32_0 = arith.constant 0 : i32
    %c0_i32_1 = arith.constant 0 : i32
    return %c0_i32, %c0_i32_0 : i32, i32
  }
  func.func @transform_5(%arg0: i32) -> (i32, i32) {
    %c0_i32 = arith.constant 0 : i32
    %c0_i32_0 = arith.constant 0 : i32
    %c0_i32_1 = arith.constant 0 : i32
    return %c0_i32, %c0_i32_0 : i32, i32
  }
  func.func @transform_6(%arg0: i32) -> (i32, i32) {
    %c0_i32 = arith.constant 0 : i32
    %c0_i32_0 = arith.constant 0 : i32
    %c0_i32_1 = arith.constant 0 : i32
    return %c0_i32, %c0_i32_0 : i32, i32
  }
  func.func @transform_7(%arg0: i32) -> (i32, i32) {
    %c0_i32 = arith.constant 0 : i32
    %c0_i32_0 = arith.constant 0 : i32
    %c0_i32_1 = arith.constant 0 : i32
    return %c0_i32, %c0_i32_0 : i32, i32
  }
  func.func @transform_8(%arg0: i32) -> (i32, i32) {
    %c0_i32 = arith.constant 0 : i32
    %c0_i32_0 = arith.constant 0 : i32
    %c0_i32_1 = arith.constant 0 : i32
    return %c0_i32, %c0_i32_0 : i32, i32
  }
  func.func @transform_9(%arg0: i32) -> (i32, i32) {
    %c0_i32 = arith.constant 0 : i32
    %c0_i32_0 = arith.constant 0 : i32
    %c0_i32_1 = arith.constant 0 : i32
    return %c0_i32, %c0_i32_0 : i32, i32
  }
  func.func @transform_10(%arg0: i32) -> (i32, i32) {
    %c0_i32 = arith.constant 0 : i32
    %c0_i32_0 = arith.constant 0 : i32
    return %arg0, %c0_i32 : i32, i32
  }
}

</mosaic_0001>

<bundles_post_ra>
// kernel: qof_mu_vision_forward.1
= control target key start
LH: loop header
LB: loop body
LE: loop exit
PB: predicated region body
PF: predicated region fallthrough
CT: control target
= control target key end

     0   :  { %15 = vsyncpa [#allocation3], 0  ;;  %s1302_s0 = inlined_call_operand.vmem [shape: f32[8,256], index: 0, kind: input, shape index: {}]   ;;  %s1303_s1 = inlined_call_operand.vmem [shape: f32[8,128], index: 1, kind: input, shape index: {}]   ;;  %s1304_s2 = inlined_call_operand.hbm [shape: bf16[256,256], index: 2, kind: input, shape index: {}]   ;;  %s1305_s3 = inlined_call_operand.vmem [shape: f32[1,256], index: 3, kind: input, shape index: {}]   ;;  %s1306_s4 = inlined_call_operand.hbm [shape: bf16[256,128], index: 4, kind: input, shape index: {}]   ;;  %s1307_s5 = inlined_call_operand.vmem [shape: f32[1,128], index: 5, kind: input, shape index: {}]   ;;  %s1308_s6 = inlined_call_operand.hbm [shape: bf16[128,256], index: 6, kind: input, shape index: {}]   ;;  %s1309_s7 = inlined_call_operand.vmem [shape: f32[1,256], index: 7, kind: input, shape index: {}]   ;;  %s1310_s8 = inlined_call_operand.hbm [shape: bf16[256,128], index: 8, kind: input, shape index: {}]   ;;  %s1311_s9 = inlined_call_operand.vmem [shape: f32[1,128], index: 9, kind: input, shape index: {}]   ;;  %s1312_s10 = inlined_call_operand.vmem [shape: f32[8,128], index: 10, kind: output, shape index: {}]  }
   0x1   :  { %16 = vsyncpa [#allocation5], 0 }
   0x2   :  { %17 = vsyncpa [#allocation8], 0  ;;  %s1184_s13 = smov [#allocation4]  }
   0x3   :  { %s41_s14 = sshll.u32 %s1184_s13, 4  ;;  %s42_s14 = int_to_ptr.vmem [resolvable:$true] %s41_s14 }
   0x4   :  { %s1106_s15 = scalar_lea.vmem %s42_s14, 2048  ;;  %p1111_p1 = scmp.lt.s32.totalorder %s42_s14, %s42_s14 }
   0x5   :  { %p1107_p0 = scmp.ne.s32.totalorder %s42_s14, %s1106_s15  ;;  %p1112_p2 = scmp.lt.s32.totalorder %s1106_s15, %s1106_s15 }
   0x7   :  { %p1113_p3 = por %p1112_p2, %p1111_p1 }
   0x9   :  { %p1114_p4 = pnand %p1113_p3, %p1107_p0 }
   0xb   :  { %1117 = shalt.err (!%p1114_p4)
}
   0xc   :  { %s1185_s16 = smov 64   ;;  %s1186_s17 = smov 4  }
   0xd   :  { %47 = dma.hbm_to_vmem [thread:$0]  %s1306_s4, 2048, %s42_s14, [#allocation5], %s1185_s16, %s1185_s16, %s1186_s17  }
   0xe   :  { %s1187_s20 = smov [#allocation2]  }
   0xf   :  { %s27_s21 = sshll.u32 %s1187_s20, 4  ;;  %s28_s21 = int_to_ptr.vmem [resolvable:$true] %s27_s21 }
  0x10   :  { %s1126_s22 = scalar_lea.vmem %s28_s21, 4096  ;;  %p1131_p6 = scmp.lt.s32.totalorder %s28_s21, %s28_s21 }
  0x11   :  { %p1127_p5 = scmp.ne.s32.totalorder %s28_s21, %s1126_s22  ;;  %p1132_p7 = scmp.lt.s32.totalorder %s1126_s22, %s1126_s22 }
  0x13   :  { %p1133_p8 = por %p1132_p7, %p1131_p6 }
  0x15   :  { %p1134_p9 = pnand %p1133_p8, %p1127_p5 }
  0x17   :  { %1137 = shalt.err (!%p1134_p9)
}
  0x18   :  { %s1188_s23 = smov 128   ;;  %s1189_s24 = smov 8  }
  0x19   :  { %33 = dma.hbm_to_vmem [thread:$0]  %s1304_s2, 4096, %s28_s21, [#allocation3], %s1188_s23, %s1188_s23, %s1189_s24  }
  0x1a   :  { %s1190_s27 = smov [#allocation6]   ;;  %s1191_s29 = smov [#allocation7]  }
  0x1b   :  { %s55_s28 = sshll.u32 %s1190_s27, 4  ;;  %s69_s4 = sshll.u32 %s1191_s29, 4  ;;  %s56_s28 = int_to_ptr.vmem [resolvable:$true] %s55_s28  ;;  %s70_s4 = int_to_ptr.vmem [resolvable:$true] %s69_s4 }
  0x1c   :  { %s1146_s30 = scalar_lea.vmem %s56_s28, 2048  ;;  %p1151_p11 = scmp.lt.s32.totalorder %s56_s28, %s56_s28 }
  0x1d   :  { %p1147_p10 = scmp.ne.s32.totalorder %s56_s28, %s1146_s30  ;;  %p1152_p12 = scmp.lt.s32.totalorder %s1146_s30, %s1146_s30 }
  0x1f   :  { %p1153_p13 = por %p1152_p12, %p1151_p11 }
  0x21   :  { %p1154_p0 = pnand %p1153_p13, %p1147_p10 }
  0x23   :  { %1157 = shalt.err (!%p1154_p0)
}
  0x24   :  { %61 = dma.hbm_to_vmem [thread:$0]  %s1308_s6, 2048, %s56_s28, [#allocation5], %s1188_s23, %s1188_s23, %s1189_s24  }
  0x25   :  { %s1166_s13 = scalar_lea.vmem %s70_s4, 2048  ;;  %p1171_p2 = scmp.lt.s32.totalorder %s70_s4, %s70_s4 }
  0x26   :  { %p1167_p1 = scmp.ne.s32.totalorder %s70_s4, %s1166_s13  ;;  %p1172_p3 = scmp.lt.s32.totalorder %s1166_s13, %s1166_s13 }
  0x28   :  { %p1173_p4 = por %p1172_p3, %p1171_p2 }
  0x2a   :  { %p1174_p5 = pnand %p1173_p4, %p1167_p1 }
  0x2c   :  { %1177 = shalt.err (!%p1174_p5)
}
  0x2d   :  { %75 = dma.hbm_to_vmem [thread:$0]  %s1310_s8, 2048, %s70_s4, [#allocation8], %s1185_s16, %s1185_s16, %s1186_s17  }
  0x2e   :  { %1178 = dma.done.wait [#allocation3], 4096  }
  0x2f   :  { %1179 = vsyncadd [#allocation3], 4294963200 }
  0x30   :  { %1180 = dma.done.wait [#allocation5], 4096  }
  0x31   :  { %1181 = vsyncadd [#allocation5], 4294963200 }
  0x32   :  { %1182 = dma.done.wait [#allocation8], 2048  }
  0x33   :  { %1183 = vsyncadd [#allocation8], 4294965248  ;;  %v994_v0 = vld [vmem:[#allocation2 + $0x74] ss:$8 sps:$4 sm:$0xff]   ;;  %v996_v1 = vld [vmem:[#allocation2 + $0x70] ss:$8 sps:$4 sm:$0xff]   ;;  %v129_v53 = vlaneseq }
  0x34   :  { %299 = vmatprep.subr.bf16.mxu0 %v994_v0  ;;  %v997_v2 = vld [vmem:[#allocation2 + $0x64] ss:$8 sps:$4 sm:$0xff]   ;;  %v999_v3 = vld [vmem:[#allocation2 + $0x60] ss:$8 sps:$4 sm:$0xff]   ;;  %v1000_v4 = vld [vmem:[#allocation2 + $0x54] ss:$8 sps:$4 sm:$0xff]  }
  0x35   :  { %300 = vmatpush1.bf16.msra.mxu0 %v996_v1  ;;  %v1002_v5 = vld [vmem:[#allocation2 + $0x50] ss:$8 sps:$4 sm:$0xff]   ;;  %v1003_v6 = vld [vmem:[#allocation2 + $0x44] ss:$8 sps:$4 sm:$0xff]   ;;  %v1005_v7 = vld [vmem:[#allocation2 + $0x40] ss:$8 sps:$4 sm:$0xff]  }
  0x36   :  { %301 = vmatprep.subr.bf16.mxu0 %v997_v2  ;;  %v1006_v8 = vld [vmem:[#allocation2 + $0x34] ss:$8 sps:$4 sm:$0xff]   ;;  %v1008_v9 = vld [vmem:[#allocation2 + $0x30] ss:$8 sps:$4 sm:$0xff]   ;;  %v1009_v10 = vld [vmem:[#allocation2 + $0x24] ss:$8 sps:$4 sm:$0xff]  }
  0x37   :  { %v1011_v11 = vld [vmem:[#allocation2 + $0x20] ss:$8 sps:$4 sm:$0xff]   ;;  %v1012_v12 = vld [vmem:[#allocation2 + $0x14] ss:$8 sps:$4 sm:$0xff]   ;;  %v1014_v13 = vld [vmem:[#allocation2 + $0x10] ss:$8 sps:$4 sm:$0xff]  }
  0x38   :  { %v92_v14 = vld [vmem:[%s1302_s0 + $0x8] sm:$0xff]  ;;  %v1042_v17 = vld [vmem:[#allocation4 + $0x78] sm:$0xff]   ;;  %v1044_v19 = vld [vmem:[#allocation4 + $0x70] sm:$0xff]   ;;  %v1272_v54 = vshrl.u32 %v129_v53, 7 }
  0x39   :  { %302 = vmatpush1.bf16.msra.mxu0 %v999_v3  ;;  %v1015_v15 = vld [vmem:[#allocation2 + $0x4] ss:$8 sps:$4 sm:$0xff]   ;;  %v94_v16 = vpack.c.bf16 %v92_v14, %v92_v14  ;;  %v1043_v18 = vld [vmem:[#allocation4 + $0x38] sm:$0xff]   ;;  %v1017_v20 = vld [vmem:[#allocation2] ss:$8 sps:$4 sm:$0xff]   ;;  %941 = vmatprep.subr.bf16.mxu1 %v1042_v17 }
  0x3a   :  { %303 = vmatprep.subr.bf16.mxu0 %v1000_v4  ;;  %942 = vmatpush3.bf16.msra.mxu1 %v1043_v18  ;;  %v1045_v21 = vld [vmem:[#allocation4 + $0x30] sm:$0xff]   ;;  %v1046_v22 = vld [vmem:[#allocation4 + $0x68] sm:$0xff]   ;;  %v1048_v26 = vld [vmem:[#allocation4 + $0x60] sm:$0xff]   ;;  %v131_v55 = vsub.s32 0, %v1272_v54  ;;  %v135_v57 = vsub.s32 1, %v1272_v54 }
  0x3b   :  { %331 = vmatprep.mubr.bf16.mxu0 %v94_v16  ;;  %943 = vmatprep.subr.bf16.mxu1 %v1044_v19  ;;  %v1018_v23 = vld [vmem:[#allocation2 + $0xf4] ss:$8 sps:$4 sm:$0xff]   ;;  %v1020_v24 = vld [vmem:[#allocation2 + $0xf0] ss:$8 sps:$4 sm:$0xff]   ;;  %v1047_v25 = vld [vmem:[#allocation4 + $0x28] sm:$0xff]  }
  0x3c   :  { %v1021_v27 = vld [vmem:[#allocation2 + $0xe4] ss:$8 sps:$4 sm:$0xff]   ;;  %v1023_v28 = vld [vmem:[#allocation2 + $0xe0] ss:$8 sps:$4 sm:$0xff]   ;;  %v1024_v30 = vld [vmem:[#allocation2 + $0xd4] ss:$8 sps:$4 sm:$0xff]  }
  0x3d   :  { %304 = vmatpush1.bf16.msra.mxu0 %v1002_v5  ;;  %v1049_v29 = vld [vmem:[#allocation4 + $0x20] sm:$0xff]   ;;  %v1050_v31 = vld [vmem:[#allocation4 + $0x58] sm:$0xff]   ;;  %v1052_v34 = vld [vmem:[#allocation4 + $0x50] sm:$0xff]  }
  0x3e   :  { %305 = vmatprep.subr.bf16.mxu0 %v1003_v6  ;;  %944 = vmatpush3.bf16.msra.mxu1 %v1045_v21  ;;  %v1051_v32 = vld [vmem:[#allocation4 + $0x18] sm:$0xff]   ;;  %v1027_v35 = vld [vmem:[#allocation2 + $0xc4] ss:$8 sps:$4 sm:$0xff]   ;;  %v1053_v36 = vld [vmem:[#allocation4 + $0x10] sm:$0xff]   ;;  %v1192_v21 = vmov 0  }
  0x3f   :  { %945 = vmatprep.subr.bf16.mxu1 %v1046_v22  ;;  %v1026_v33 = vld [vmem:[#allocation2 + $0xd0] ss:$8 sps:$4 sm:$0xff]   ;;  %v1029_v37 = vld [vmem:[#allocation2 + $0xc0] ss:$8 sps:$4 sm:$0xff]   ;;  %v1030_v38 = vld [vmem:[#allocation2 + $0xb4] ss:$8 sps:$4 sm:$0xff]  }
  0x40   :  { %v1032_v39 = vld [vmem:[#allocation2 + $0xb0] ss:$8 sps:$4 sm:$0xff]   ;;  %v1033_v40 = vld [vmem:[#allocation2 + $0xa4] ss:$8 sps:$4 sm:$0xff]   ;;  %v1035_v41 = vld [vmem:[#allocation2 + $0xa0] ss:$8 sps:$4 sm:$0xff]  }
  0x41   :  { %306 = vmatpush1.bf16.msra.mxu0 %v1005_v7  ;;  %v1036_v42 = vld [vmem:[#allocation2 + $0x94] ss:$8 sps:$4 sm:$0xff]   ;;  %v1038_v43 = vld [vmem:[#allocation2 + $0x90] ss:$8 sps:$4 sm:$0xff]   ;;  %v1039_v44 = vld [vmem:[#allocation2 + $0x84] ss:$8 sps:$4 sm:$0xff]  }
  0x42   :  { %307 = vmatprep.subr.bf16.mxu0 %v1006_v8  ;;  %946 = vmatpush3.bf16.msra.mxu1 %v1047_v25  ;;  %v1041_v45 = vld [vmem:[#allocation2 + $0x80] ss:$8 sps:$4 sm:$0xff]   ;;  %v1060_v52 = vld [vmem:[#allocation6 + $0x74] ss:$8 sps:$4 sm:$0xff]   ;;  %v1058_v5 = vld [vmem:[#allocation6 + $0x70] ss:$8 sps:$4 sm:$0xff]  }
  0x43   :  { %947 = vmatprep.subr.bf16.mxu1 %v1048_v26  ;;  %v91_v46 = vld [vmem:[%s1302_s0] sm:$0xff]  ;;  %v1054_v48 = vld [vmem:[#allocation4 + $0x48] sm:$0xff]   ;;  %v1070_v14 = vld [vmem:[#allocation6 + $0x30] ss:$8 sps:$4 sm:$0xff]  }
  0x44   :  { %v93_v47 = vpack.c.bf16 %v91_v46, %v91_v46  ;;  %v1055_v49 = vld [vmem:[#allocation4 + $0x8] sm:$0xff]   ;;  %v1056_v50 = vld [vmem:[#allocation4 + $0x40] sm:$0xff]   ;;  %v1078_v17 = vld [vmem:[#allocation6 + $0x14] ss:$8 sps:$4 sm:$0xff]  }
  0x45   :  { %308 = vmatpush1.bf16.msra.mxu0 %v1008_v9  ;;  %v1057_v51 = vld [vmem:[#allocation4] sm:$0xff]   ;;  %v1066_v9 = vld [vmem:[#allocation6 + $0x54] ss:$8 sps:$4 sm:$0xff]   ;;  %v1076_v18 = vld [vmem:[#allocation6 + $0x10] ss:$8 sps:$4 sm:$0xff]  }
  0x46   :  { %309 = vmatprep.subr.bf16.mxu0 %v1009_v10  ;;  %948 = vmatpush3.bf16.msra.mxu1 %v1049_v29  ;;  %v127_v56 = vld [vmem:[%s1305_s3] sm:$0x3]  ;;  %v1063_v7 = vld [vmem:[#allocation6 + $0x64] ss:$8 sps:$4 sm:$0xff]   ;;  %v1064_v10 = vld [vmem:[#allocation6 + $0x50] ss:$8 sps:$4 sm:$0xff]  }
  0x47   :  { %949 = vmatprep.subr.bf16.mxu1 %v1050_v31  ;;  %v132_v58 = vrot.slane %v127_v56, %v131_v55  ;;  %v136_v59 = vrot.slane %v127_v56, %v135_v57  ;;  %v1061_v8 = vld [vmem:[#allocation6 + $0x60] ss:$8 sps:$4 sm:$0xff]   ;;  %v1081_v19 = vld [vmem:[#allocation6 + $0x4] ss:$8 sps:$4 sm:$0xff]   ;;  %v1082_v22 = vld [vmem:[#allocation7 + $0x78] sm:$0xff]  }
  0x48   :  { %v1073_v16 = vld [vmem:[#allocation6 + $0x20] ss:$8 sps:$4 sm:$0xff]   ;;  %v1085_v25 = vld [vmem:[#allocation7 + $0x30] sm:$0xff]   ;;  %v1091_v31 = vld [vmem:[#allocation7 + $0x18] sm:$0xff]  }
  0x49   :  { %310 = vmatpush1.bf16.msra.mxu0 %v1011_v11  ;;  %v1069_v11 = vld [vmem:[#allocation6 + $0x44] ss:$8 sps:$4 sm:$0xff]  }
  0x4a   :  { %311 = vmatprep.subr.bf16.mxu0 %v1012_v12  ;;  %950 = vmatpush3.bf16.msra.mxu1 %v1051_v32  ;;  %v1067_v12 = vld [vmem:[#allocation6 + $0x40] ss:$8 sps:$4 sm:$0xff]   ;;  %v1092_v32 = vld [vmem:[#allocation7 + $0x50] sm:$0xff]  }
  0x4b   :  { %951 = vmatprep.subr.bf16.mxu1 %v1052_v34  ;;  %v1086_v26 = vld [vmem:[#allocation7 + $0x68] sm:$0xff]   ;;  %v1089_v29 = vld [vmem:[#allocation7 + $0x20] sm:$0xff]  }
  0x4c   :  { %v1095_v46 = vld [vmem:[#allocation7 + $0x8] sm:$0xff]  }
  0x4d   :  { %312 = vmatpush1.bf16.msra.mxu0 %v1014_v13  ;;  %v1072_v13 = vld [vmem:[#allocation6 + $0x34] ss:$8 sps:$4 sm:$0xff]  }
  0x4e   :  { %313 = vmatprep.subr.bf16.mxu0 %v1015_v15  ;;  %952 = vmatpush3.bf16.msra.mxu1 %v1053_v36  ;;  %v1075_v15 = vld [vmem:[#allocation6 + $0x24] ss:$8 sps:$4 sm:$0xff]  }
  0x4f   :  { %953 = vmatprep.subr.bf16.mxu1 %v1054_v48  ;;  %v1097_v48 = vld [vmem:[#allocation7] sm:$0xff]  }
  0x51   :  { %314 = vmatpush1.bf16.msra.mxu0 %v1017_v20  ;;  %v1079_v20 = vld [vmem:[#allocation6] ss:$8 sps:$4 sm:$0xff]  }
  0x52   :  { %315 = vmatprep.subr.bf16.mxu0 %v1018_v23  ;;  %954 = vmatpush3.bf16.msra.mxu1 %v1055_v49  ;;  %v1083_v23 = vld [vmem:[#allocation7 + $0x38] sm:$0xff]   ;;  %v539_v49 = vld [vmem:[%s1309_s7] sm:$0x3] }
  0x53   :  { %955 = vmatprep.subr.bf16.mxu1 %v1056_v50  ;;  %v544_v50 = vrot.slane %v539_v49, %v131_v55  ;;  %v924_v55 = vld [vmem:[%s1311_s9] ss:$0 sm:$0xff] }
  0x55   :  { %316 = vmatpush2.bf16.msra.mxu0 %v1020_v24  ;;  %v1084_v24 = vld [vmem:[#allocation7 + $0x70] sm:$0xff]  }
  0x56   :  { %317 = vmatprep.subr.bf16.mxu0 %v1021_v27  ;;  %956 = vmatpush3.bf16.msra.mxu1 %v1057_v51  ;;  %v1087_v27 = vld [vmem:[#allocation7 + $0x28] sm:$0xff]   ;;  %v548_v51 = vrot.slane %v539_v49, %v135_v57 }
  0x57   :  { %631 = vmatprep.subr.bf16.mxu1 %v1060_v52 }
  0x59   :  { %318 = vmatpush2.bf16.msra.mxu0 %v1023_v28  ;;  %v1088_v28 = vld [vmem:[#allocation7 + $0x60] sm:$0xff]  }
  0x5a   :  { %319 = vmatprep.subr.bf16.mxu0 %v1024_v30  ;;  %v1090_v30 = vld [vmem:[#allocation7 + $0x58] sm:$0xff]  }
  0x5d   :  { %320 = vmatpush2.bf16.msra.mxu0 %v1026_v33  ;;  %v1093_v33 = vld [vmem:[#allocation7 + $0x10] sm:$0xff]  }
  0x5e   :  { %321 = vmatprep.subr.bf16.mxu0 %v1027_v35  ;;  %v891_v35 = vld [vmem:[%s1307_s5] ss:$0 sm:$0xff] }
  0x61   :  { %322 = vmatpush2.bf16.msra.mxu0 %v1029_v37 }
  0x62   :  { %323 = vmatprep.subr.bf16.mxu0 %v1030_v38 }
  0x65   :  { %324 = vmatpush2.bf16.msra.mxu0 %v1032_v39 }
  0x66   :  { %325 = vmatprep.subr.bf16.mxu0 %v1033_v40  ;;  %v520_v40 = vld [vmem:[%s1303_s1] sm:$0xff] }
  0x69   :  { %326 = vmatpush2.bf16.msra.mxu0 %v1035_v41 }
  0x6a   :  { %327 = vmatprep.subr.bf16.mxu0 %v1036_v42 }
  0x6d   :  { %328 = vmatpush2.bf16.msra.mxu0 %v1038_v43 }
  0x6e   :  { %329 = vmatprep.subr.bf16.mxu0 %v1039_v44 }
  0x71   :  { %330 = vmatpush2.bf16.msra.mxu0 %v1041_v45  ;;  %v1094_v45 = vld [vmem:[#allocation7 + $0x48] sm:$0xff]  }
  0x72   :  { %963 = vmatprep.subr.bf16.mxu0 %v1082_v22 }
  0x74   :  { %332 = vmatmul.mubr.bf16.vlgmr.msra.gmra.mxu0 %v93_v47  ;;  %v1096_v47 = vld [vmem:[#allocation7 + $0x40] sm:$0xff]  }
  0x75   :  { %964 = vmatpush3.bf16.msra.mxu0 %v1083_v23 }
  0x76   :  { %965 = vmatprep.subr.bf16.mxu0 %v1084_v24 }
  0x79   :  { %966 = vmatpush3.bf16.msra.mxu0 %v1085_v25 }
  0x7a   :  { %967 = vmatprep.subr.bf16.mxu0 %v1086_v26 }
  0x7d   :  { %968 = vmatpush3.bf16.msra.mxu0 %v1087_v27 }
  0x7e   :  { %969 = vmatprep.subr.bf16.mxu0 %v1088_v28 }
  0x81   :  { %970 = vmatpush3.bf16.msra.mxu0 %v1089_v29 }
  0x82   :  { %971 = vmatprep.subr.bf16.mxu0 %v1090_v30 }
  0x85   :  { %972 = vmatpush3.bf16.msra.mxu0 %v1091_v31 }
  0x86   :  { %973 = vmatprep.subr.bf16.mxu0 %v1092_v32 }
  0x89   :  { %974 = vmatpush3.bf16.msra.mxu0 %v1093_v33 }
  0x8a   :  { %975 = vmatprep.subr.bf16.mxu0 %v1094_v45 }
  0x8d   :  { %976 = vmatpush3.bf16.msra.mxu0 %v1095_v46 }
  0x8e   :  { %977 = vmatprep.subr.bf16.mxu0 %v1096_v47 }
  0x91   :  { %978 = vmatpush3.bf16.msra.mxu0 %v1097_v48 }
 0x134   :  { %v333_v60 = vpop.f32.mrf.mxu0 }
 0x135   :  { %v334_v61 = vadd.f32 %v333_v60, %v132_v58 }
 0x136   :  { %v335_v62 = vpop.f32.mrf.mxu0 }
 0x137   :  { %v336_v63 = vadd.f32 %v335_v62, %v136_v59  ;;  %v340_v0 = vmax.f32 %v334_v61, 0.0 }
 0x138   :  { %v337_v1 = vpop.f32.mrf.mxu0 }
 0x139   :  { %v341_v2 = vmax.f32 %v336_v63, 0.0  ;;  %v342_v6 = vpack.c.bf16 %v340_v0, %v340_v0 }
 0x13a   :  { %v338_v3 = vpop.f32.mrf.mxu0 }
 0x13b   :  { %v343_v4 = vpack.c.bf16 %v341_v2, %v341_v2 }
 0x13d   :  { %511 = vmatprep.mubr.bf16.mxu1 %v343_v4 }
 0x13e   :  { %512 = vmatmul.mubr.bf16.vlgmr.msra.gmra.mxu1 %v342_v6 }
 0x13f   :  { %632 = vmatpush1.bf16.msra.mxu1 %v1058_v5  ;;  %663 = vmatprep.mubr.bf16.mxu1 %v1192_v21 }
 0x140   :  { %633 = vmatprep.subr.bf16.mxu1 %v1063_v7 }
 0x143   :  { %634 = vmatpush1.bf16.msra.mxu1 %v1061_v8 }
 0x144   :  { %635 = vmatprep.subr.bf16.mxu1 %v1066_v9 }
 0x147   :  { %636 = vmatpush1.bf16.msra.mxu1 %v1064_v10 }
 0x148   :  { %637 = vmatprep.subr.bf16.mxu1 %v1069_v11 }
 0x14b   :  { %638 = vmatpush1.bf16.msra.mxu1 %v1067_v12 }
 0x14c   :  { %639 = vmatprep.subr.bf16.mxu1 %v1072_v13 }
 0x14f   :  { %640 = vmatpush1.bf16.msra.mxu1 %v1070_v14 }
 0x150   :  { %641 = vmatprep.subr.bf16.mxu1 %v1075_v15 }
 0x153   :  { %642 = vmatpush1.bf16.msra.mxu1 %v1073_v16 }
 0x154   :  { %643 = vmatprep.subr.bf16.mxu1 %v1078_v17 }
 0x157   :  { %644 = vmatpush1.bf16.msra.mxu1 %v1076_v18 }
 0x158   :  { %645 = vmatprep.subr.bf16.mxu1 %v1081_v19 }
 0x15b   :  { %646 = vmatpush1.bf16.msra.mxu1 %v1079_v20 }
 0x1fe   :  { %v957_v34 = vpop.f32.mrf.mxu1 }
 0x200   :  { %v958_v36 = vpop.f32.mrf.mxu1 }
 0x201   :  { %v959_v37 = vadd.f32 %v958_v36, %v957_v34 }
 0x202   :  { %v960_v38 = vpop.f32.mrf.mxu1 }
 0x203   :  { %v514_v39 = vadd.f32 %v959_v37, %v891_v35 }
 0x204   :  { %v961_v41 = vpop.f32.mrf.mxu1 }
 0x205   :  { %v519_v42 = vmax.f32 %v514_v39, 0.0 }
 0x207   :  { %v521_v43 = vadd.f32 %v520_v40, %v519_v42 }
 0x209   :  { %v522_v44 = vpack.c.bf16 %v521_v43, %v521_v43 }
 0x20b   :  { %664 = vmatmul.mubr.bf16.vlgmr.msra.gmra.mxu1 %v522_v44 }
 0x2cb   :  { %v665_v52 = vpop.f32.mrf.mxu1 }
 0x2cc   :  { %v666_v53 = vadd.f32 %v665_v52, %v544_v50 }
 0x2cd   :  { %v667_v56 = vpop.f32.mrf.mxu1 }
 0x2ce   :  { %v668_v58 = vadd.f32 %v667_v56, %v548_v51  ;;  %v672_v59 = vmax.f32 %v666_v53, 0.0 }
 0x2cf   :  { %v669_v60 = vpop.f32.mrf.mxu1 }
 0x2d0   :  { %v673_v61 = vmax.f32 %v668_v58, 0.0  ;;  %v674_v0 = vpack.c.bf16 %v672_v59, %v672_v59 }
 0x2d1   :  { %v670_v62 = vpop.f32.mrf.mxu1 }
 0x2d2   :  { %v675_v63 = vpack.c.bf16 %v673_v61, %v673_v61 }
 0x2d4   :  { %843 = vmatprep.mubr.bf16.mxu0 %v675_v63 }
 0x2d5   :  { %844 = vmatmul.mubr.bf16.vlgmr.msra.gmra.mxu0 %v674_v0 }
 0x395   :  { %v979_v1 = vpop.f32.mrf.mxu0 }
 0x397   :  { %v980_v2 = vpop.f32.mrf.mxu0 }
 0x398   :  { %v981_v54 = vadd.f32 %v980_v2, %v979_v1 }
 0x399   :  { %v982_v57 = vpop.f32.mrf.mxu0 }
 0x39a   :  { %v846_v3 = vadd.f32 %v981_v54, %v924_v55 }
 0x39b   :  { %v983_v4 = vpop.f32.mrf.mxu0 }
 0x39c   :  { %851 = vst [vmem:[%s1312_s10] sm:$0xff] %v846_v3 }
 0x39d   :  { %856 = vsyncpa [#allocation3], 1 }
 0x39e   :  { %857 = vsyncpa [#allocation5], 1 }
 0x39f   :  { %858 = vsyncpa [#allocation8], 1 }

</bundles_post_ra>
